<compile_context>
chip_gen: v6e
topology: v6e:2x2x1
jax: 0.10.0
libtpu: 0.0.40
codegen_flags: <defaults>
</compile_context>

<pallas_src>
import functools

import jax
import jax.numpy as jnp
from jax.experimental import pallas as pl
from jax.experimental.pallas import tpu as pltpu


def _round_up(x, m):
    return ((x + m - 1) // m) * m


def _patch_embed_kernel(patches_ref, weight_ref, bias_ref, out_ref):
    # (tm, K_pad) @ (K_pad, tn) on the MXU with f32 accumulation; bias add on
    # the VPU. The implicit f32 `acc` temporary is counted in the VMEM budget.
    acc = jnp.dot(patches_ref[...], weight_ref[...],
                  preferred_element_type=jnp.float32)
    out_ref[...] = (acc + bias_ref[...]).astype(out_ref.dtype)


def _vmem_capacity_bytes():
    # Physical per-TensorCore VMEM; conservative (v7x, 64 MiB) fallback if the
    # query is unavailable.
    try:
        cap = int(pltpu.get_tpu_info().vmem_capacity_bytes)
        if cap > 0:
            return cap
    except Exception:
        pass
    return 64 * 2 ** 20


def _tile_need_bytes(tm, tn, K_pad, in_bytes, out_bytes, weight_bufs):
    return (2 * tm * K_pad * in_bytes                        # patches tile x2
            + weight_bufs * (K_pad * tn * in_bytes + tn * 4)  # weight + bias
            + 2 * tm * tn * out_bytes                        # output tile x2
            + tm * tn * 4)                                   # implicit f32 acc


def _choose_tiles(M, K_pad, E_pad, in_bytes, out_bytes, budget):
    """Pick (tm, tn, weight_resident, per_step_bytes).

    Prefers a fully resident, single-buffered weight (tn == E_pad); within the
    VMEM budget, picks the tm (multiple of 128) minimizing M padding
    (ties -> larger tm). Falls back to tiling E when the weight is too big.
    """
    tm_cands = [t for t in (2048, 1024, 512, 256, 128)
                if t <= max(128, _round_up(M, 128))]
    if not tm_cands:
        tm_cands = [128]

    best = None
    for tm in tm_cands:
        need = _tile_need_bytes(tm, E_pad, K_pad, in_bytes, out_bytes, 1)
        if need > budget:
            continue
        key = (_round_up(M, tm) - M, -tm)
        if best is None or key < best[0]:
            best = (key, tm, need)
    if best is not None:
        return best[1], E_pad, True, best[2]

    # Weight does not fit resident: add an E grid axis (double-buffered tiles).
    tn_cands = [t for t in (1024, 512, 256, 128) if E_pad % t == 0]
    best = None
    for tn in tn_cands:
        for tm in tm_cands:
            need = _tile_need_bytes(tm, tn, K_pad, in_bytes, out_bytes, 2)
            if need > budget:
                continue
            key = (_round_up(M, tm) - M, -tm, -tn)
            if best is None or key < best[0]:
                best = (key, tm, tn, need)
    if best is not None:
        return best[1], best[2], False, best[3]

    # Last resort: smallest tiles even if over budget (vmem_limit is raised).
    return 128, 128, False, _tile_need_bytes(128, 128, K_pad, in_bytes,
                                             out_bytes, 2)


def _resident_spec(block_shape, index_map):
    # Constant index_map -> fetched once; single-buffering saves VMEM.
    try:
        return pl.BlockSpec(block_shape, index_map,
                            pipeline_mode=pl.Buffered(1))
    except (AttributeError, TypeError, ValueError):
        return pl.BlockSpec(block_shape, index_map)


@functools.partial(jax.jit,
                   static_argnames=("patch_size", "compute_dtype", "out_dtype"))
def conv_patch_embedding(x, weight, bias, patch_size,
                         compute_dtype=jnp.bfloat16, out_dtype=None):
    """Conv2d(C, E, kernel=p, stride=p) -> flatten(2) -> transpose(1, 2).

    Args:
      x:      (B, C, H, W) NCHW input (PyTorch convention).
      weight: (E, C, p, p) Conv2d weight.
      bias:   (E,)         Conv2d bias.
      patch_size: p.
      compute_dtype: dtype of GEMM operands (accumulation is always f32).
      out_dtype: output dtype; None -> x.dtype (PyTorch-faithful). Pass bf16
        when the downstream consumer re-casts anyway to halve the writeback.

    Returns:
      (B, N, E) with N = (H//p) * (W//p).
    """
    B, C, H, W = x.shape
    E = weight.shape[0]
    p = patch_size
    assert H % p == 0 and W % p == 0
    gh, gw = H // p, W // p
    N = gh * gw
    K = C * p * p
    M = B * N

    in_dtype = jnp.dtype(compute_dtype)
    out_dtype = jnp.dtype(x.dtype if out_dtype is None else out_dtype)
    in_bytes = in_dtype.itemsize
    out_bytes = out_dtype.itemsize

    K_pad = _round_up(K, 128)
    E_pad = _round_up(E, 128)

    # Generation-aware VMEM budget: 24 MiB on v7x (64 MiB/TC), 48 MiB on
    # v5e/v6e (128 MiB/TC).
    capacity = _vmem_capacity_bytes()
    budget = 48 * 2 ** 20 if capacity >= 100 * 2 ** 20 else 24 * 2 ** 20
    tm, tn, weight_resident, step_need = _choose_tiles(
        M, K_pad, E_pad, in_bytes, out_bytes, budget)
    M_pad = _round_up(M, tm)

    # --- layout glue (plain JAX) --------------------------------------------
    # Cast to compute_dtype BEFORE the im2col reshape/transpose so the
    # transposed HBM intermediate is half the bytes of an f32 copy.
    # TODO(synk): for large images, fuse the im2col into the kernel (NCHW input
    # with memory_space=pl.ANY + per-patch-row strided make_async_copy) to
    # avoid this extra HBM round-trip entirely.
    x_c = x if x.dtype == in_dtype else x.astype(in_dtype)
    # x[b, c, gi*p+kh, gj*p+kw] -> patches[b*N + gi*gw + gj, c*p*p + kh*p + kw]
    patches = x_c.reshape(B, C, gh, p, gw, p)
    patches = patches.transpose(0, 2, 4, 1, 3, 5).reshape(M, K)
    if M_pad != M or K_pad != K:
        patches = jnp.pad(patches, ((0, M_pad - M), (0, K_pad - K)))

    # Conv2d weight (E, C, p, p) -> (K, E); bias -> (1, E) in f32.
    w_mat = weight.astype(in_dtype).reshape(E, K).T
    b_mat = bias.astype(jnp.float32).reshape(1, E)
    if K_pad != K or E_pad != E:
        w_mat = jnp.pad(w_mat, ((0, K_pad - K), (0, E_pad - E)))
    if E_pad != E:
        b_mat = jnp.pad(b_mat, ((0, 0), (0, E_pad - E)))

    grid = (M_pad // tm, E_pad // tn)

    if weight_resident:
        w_spec = _resident_spec((K_pad, tn), lambda i, j: (0, j))
        b_spec = _resident_spec((1, tn), lambda i, j: (0, j))
    else:
        w_spec = pl.BlockSpec((K_pad, tn), lambda i, j: (0, j))
        b_spec = pl.BlockSpec((1, tn), lambda i, j: (0, j))

    # Declared VMEM limit: working set + slack, capped below physical per-TC
    # VMEM (10% headroom) so v7x never sees a >physical limit.
    vmem_limit = int(min(capacity - capacity // 10,
                         max(32 * 2 ** 20, step_need + (4 << 20))))

    weight_fetches = 1 if weight_resident else (M_pad // tm)
    cost = pl.CostEstimate(
        flops=2 * M_pad * K_pad * E_pad,
        transcendentals=0,
        bytes_accessed=(M_pad * K_pad * in_bytes
                        + weight_fetches * K_pad * E_pad * in_bytes
                        + E_pad * 4
                        + M_pad * E_pad * out_bytes),
    )

    out = pl.pallas_call(
        _patch_embed_kernel,
        out_shape=jax.ShapeDtypeStruct((M_pad, E_pad), out_dtype),
        grid_spec=pltpu.PrefetchScalarGridSpec(
            num_scalar_prefetch=0,
            grid=grid,
            in_specs=[
                pl.BlockSpec((tm, K_pad), lambda i, j: (i, 0)),
                w_spec,
                b_spec,
            ],
            out_specs=pl.BlockSpec((tm, tn), lambda i, j: (i, j)),
        ),
        compiler_params=pltpu.CompilerParams(
            # Both axes are independent; megacore-shards on v7x, no-op elsewhere.
            dimension_semantics=("parallel", "parallel"),
            vmem_limit_bytes=vmem_limit,
        ),
        cost_estimate=cost,
    )(patches, w_mat, b_mat)

    if M_pad != M or E_pad != E:
        out = out[:M, :E]
    return out.reshape(B, N, E)


def _reference(x, weight, bias, patch_size):
    """Pure-JAX reference implementing the PyTorch forward exactly (f32)."""
    out = jax.lax.conv_general_dilated(
        x.astype(jnp.float32),
        weight.astype(jnp.float32),
        window_strides=(patch_size, patch_size),
        padding="VALID",
        dimension_numbers=("NCHW", "OIHW", "NCHW"),
    ) + bias.astype(jnp.float32).reshape(1, -1, 1, 1)
    B, E, gh, gw = out.shape
    return out.reshape(B, E, gh * gw).transpose(0, 2, 1)  # flatten(2).transpose(1,2)


if __name__ == "__main__":
    key = jax.random.PRNGKey(0)

    # --- Config 1: img=16, patch=4, C=4, E=32, B=2 (K=64 -> padded to 128) ---
    B, C, H, W, p, E = 2, 4, 16, 16, 4, 32
    kx, kw, kb = jax.random.split(key, 3)
    x = jax.random.normal(kx, (B, C, H, W), dtype=jnp.float32)
    weight = jax.random.normal(kw, (E, C, p, p), dtype=jnp.float32) * 0.05
    bias = jax.random.normal(kb, (E,), dtype=jnp.float32) * 0.05
    ref = _reference(x, weight, bias, p)
    N = (H // p) * (W // p)

    # f32-operand path (tolerance covers MXU precision-mode differences).
    out_f32 = jax.block_until_ready(
        conv_patch_embedding(x, weight, bias, p, compute_dtype=jnp.float32))
    assert out_f32.shape == (B, N, E), out_f32.shape
    assert jnp.allclose(out_f32, ref, atol=1e-2, rtol=1e-2), (
        float(jnp.max(jnp.abs(out_f32 - ref))))

    # Default bf16-operand path (f32 MXU accumulation): production config.
    out_bf16 = jax.block_until_ready(conv_patch_embedding(x, weight, bias, p))
    assert out_bf16.shape == (B, N, E), out_bf16.shape
    assert jnp.allclose(out_bf16, ref, atol=5e-2, rtol=5e-2), (
        float(jnp.max(jnp.abs(out_bf16 - ref))))

    # --- Config 2: no-padding path (K=M=E=128) + bf16 output ----------------
    B2, C2, H2, W2, p2, E2 = 2, 2, 64, 64, 8, 128
    kx2, kw2, kb2 = jax.random.split(jax.random.PRNGKey(1), 3)
    x2 = jax.random.normal(kx2, (B2, C2, H2, W2), dtype=jnp.float32)
    w2 = jax.random.normal(kw2, (E2, C2, p2, p2), dtype=jnp.float32) * 0.05
    b2 = jax.random.normal(kb2, (E2,), dtype=jnp.float32) * 0.05
    ref2 = _reference(x2, w2, b2, p2)
    N2 = (H2 // p2) * (W2 // p2)

    out2 = jax.block_until_ready(
        conv_patch_embedding(x2, w2, b2, p2, out_dtype=jnp.bfloat16))
    assert out2.shape == (B2, N2, E2), out2.shape
    assert out2.dtype == jnp.bfloat16
    assert jnp.allclose(out2.astype(jnp.float32), ref2, atol=5e-2, rtol=5e-2), (
        float(jnp.max(jnp.abs(out2.astype(jnp.float32) - ref2))))

    print("KERNEL_OK")
</pallas_src>

<mosaic_0001>
module attributes {stable_mosaic.version = 11 : i64} {
  func.func @_patch_embed_kernel(%arg0: i32, %arg1: i32, %arg2: memref<128x128xf32, #tpu.memory_space<vmem>>, %arg3: memref<128x128xf32, #tpu.memory_space<vmem>>, %arg4: memref<1x128xf32, #tpu.memory_space<vmem>>, %arg5: memref<128x128xf32, #tpu.memory_space<vmem>>) attributes {dimension_semantics = [#tpu.dimension_semantics<parallel>, #tpu.dimension_semantics<parallel>], iteration_bounds = array<i64: 1, 1>, scalar_prefetch = 0 : i64, scratch_operands = 0 : i64, tpu.core_type = #tpu.core_type<tc>, window_params = [{transform_indices = @transform_0, window_bounds = array<i64: 128, 128>}, {pipeline_mode = #tpu.pipeline_mode<synchronous>, transform_indices = @transform_1, window_bounds = array<i64: 128, 128>}, {pipeline_mode = #tpu.pipeline_mode<synchronous>, transform_indices = @transform_2, window_bounds = array<i64: 1, 128>}, {transform_indices = @transform_3, window_bounds = array<i64: 128, 128>}]} {
    %c0 = arith.constant 0 : index
    %c0_0 = arith.constant 0 : index
    %0 = vector.load %arg2[%c0, %c0_0] : memref<128x128xf32, #tpu.memory_space<vmem>>, vector<128x128xf32>
    %c0_1 = arith.constant 0 : index
    %c0_2 = arith.constant 0 : index
    %1 = vector.load %arg3[%c0_1, %c0_2] : memref<128x128xf32, #tpu.memory_space<vmem>>, vector<128x128xf32>
    %cst = arith.constant dense<0.000000e+00> : vector<128x128xf32>
    %2 = tpu.matmul %0, %1, %cst {dimension_numbers = #tpu.dot_dimension_numbers<[1], [0], [0], [1], [0, 0, 1, 1], [], []>} : vector<128x128xf32>, vector<128x128xf32>, vector<128x128xf32> -> vector<128x128xf32>
    %c0_3 = arith.constant 0 : index
    %c0_4 = arith.constant 0 : index
    %3 = vector.load %arg4[%c0_3, %c0_4] : memref<1x128xf32, #tpu.memory_space<vmem>>, vector<1x128xf32>
    %4 = vector.broadcast %3 : vector<1x128xf32> to vector<128x128xf32>
    %5 = arith.addf %2, %4 : vector<128x128xf32>
    %c0_5 = arith.constant 0 : index
    %c0_6 = arith.constant 0 : index
    %6 = vector.load %arg5[%c0_5, %c0_6] : memref<128x128xf32, #tpu.memory_space<vmem>>, vector<128x128xf32>
    tpu.vector_store %arg5[%c0_5, %c0_6], %5 {strides = array<i32>} : memref<128x128xf32, #tpu.memory_space<vmem>>, vector<128x128xf32>,
    return
  }
  func.func @transform_0(%arg0: i32, %arg1: i32) -> (i32, i32) {
    %c0_i32 = arith.constant 0 : i32
    %c0_i32_0 = arith.constant 0 : i32
    return %arg0, %c0_i32 : i32, i32
  }
  func.func @transform_1(%arg0: i32, %arg1: i32) -> (i32, i32) {
    %c0_i32 = arith.constant 0 : i32
    %c0_i32_0 = arith.constant 0 : i32
    return %c0_i32, %arg1 : i32, i32
  }
  func.func @transform_2(%arg0: i32, %arg1: i32) -> (i32, i32) {
    %c0_i32 = arith.constant 0 : i32
    %c0_i32_0 = arith.constant 0 : i32
    return %c0_i32, %arg1 : i32, i32
  }
  func.func @transform_3(%arg0: i32, %arg1: i32) -> (i32, i32) {
    %c0_i32 = arith.constant 0 : i32
    return %arg0, %arg1 : i32, i32
  }
}

</mosaic_0001>

<bundles_post_ra>
// kernel: conv_patch_embedding.1
= control target key start
LH: loop header
LB: loop body
LE: loop exit
PB: predicated region body
PF: predicated region fallthrough
CT: control target
= control target key end

     0   :  { %s506_s1 = inlined_call_operand.vmem [shape: f32[128,128], index: 1, kind: input, shape index: {}]   ;;  %s507_s0 = inlined_call_operand.vmem [shape: f32[128,128], index: 0, kind: input, shape index: {}]   ;;  %s508_s2 = inlined_call_operand.vmem [shape: f32[1,128], index: 2, kind: input, shape index: {}]   ;;  %s509_s3 = inlined_call_operand.vmem [shape: f32[128,128], index: 3, kind: output, shape index: {}]  }
   0x1   :  { %v45_v0 = vld [vmem:[%s506_s1 + $0x78] sm:$0xff]  ;;  %v44_v1 = vld [vmem:[%s506_s1 + $0x70] sm:$0xff]  ;;  %v43_v2 = vld [vmem:[%s506_s1 + $0x68] sm:$0xff] }
   0x2   :  { %251 = vmatprep.subr.mxu0 %v45_v0  ;;  %307 = vmatprep.subr.mxu1 %v45_v0  ;;  %v42_v3 = vld [vmem:[%s506_s1 + $0x60] sm:$0xff]  ;;  %v41_v4 = vld [vmem:[%s506_s1 + $0x58] sm:$0xff]  ;;  %v40_v5 = vld [vmem:[%s506_s1 + $0x50] sm:$0xff] }
   0x3   :  { %252 = vmatpush3.msra.mxu0 %v45_v0  ;;  %323 = vmatpush3.msra.mxu1 %v45_v0  ;;  %v39_v6 = vld [vmem:[%s506_s1 + $0x48] sm:$0xff]  ;;  %v38_v7 = vld [vmem:[%s506_s1 + $0x40] sm:$0xff]  ;;  %v37_v8 = vld [vmem:[%s506_s1 + $0x38] sm:$0xff] }
   0x4   :  { %253 = vmatprep.subr.mxu0 %v44_v1  ;;  %308 = vmatprep.subr.mxu1 %v44_v1  ;;  %v36_v9 = vld [vmem:[%s506_s1 + $0x30] sm:$0xff]  ;;  %v35_v10 = vld [vmem:[%s506_s1 + $0x28] sm:$0xff]  ;;  %v34_v11 = vld [vmem:[%s506_s1 + $0x20] sm:$0xff] }
   0x5   :  { %254 = vmatpush3.msra.mxu0 %v44_v1  ;;  %324 = vmatpush3.msra.mxu1 %v44_v1  ;;  %v33_v12 = vld [vmem:[%s506_s1 + $0x18] sm:$0xff]  ;;  %v32_v13 = vld [vmem:[%s506_s1 + $0x10] sm:$0xff]  ;;  %v31_v14 = vld [vmem:[%s506_s1 + $0x8] sm:$0xff] }
   0x6   :  { %255 = vmatprep.subr.mxu0 %v43_v2  ;;  %309 = vmatprep.subr.mxu1 %v43_v2  ;;  %v30_v15 = vld [vmem:[%s506_s1] sm:$0xff]  ;;  %v15_v18 = vld [vmem:[%s507_s0 + $0x8] sm:$0xff]  ;;  %v16_v20 = vld [vmem:[%s507_s0 + $0x10] sm:$0xff] }
   0x7   :  { %256 = vmatpush3.msra.mxu0 %v43_v2  ;;  %325 = vmatpush3.msra.mxu1 %v43_v2  ;;  %v14_v16 = vld [vmem:[%s507_s0] sm:$0xff]  ;;  %v23_v19 = vld [vmem:[%s507_s0 + $0x48] sm:$0xff]  ;;  %v24_v21 = vld [vmem:[%s507_s0 + $0x50] sm:$0xff] }
   0x8   :  { %257 = vmatprep.subr.mxu0 %v42_v3  ;;  %310 = vmatprep.subr.mxu1 %v42_v3  ;;  %v22_v17 = vld [vmem:[%s507_s0 + $0x40] sm:$0xff]  ;;  %v17_v22 = vld [vmem:[%s507_s0 + $0x18] sm:$0xff]  ;;  %v19_v26 = vld [vmem:[%s507_s0 + $0x28] sm:$0xff] }
   0x9   :  { %258 = vmatpush3.msra.mxu0 %v42_v3  ;;  %326 = vmatpush3.msra.mxu1 %v42_v3  ;;  %v25_v23 = vld [vmem:[%s507_s0 + $0x58] sm:$0xff]  ;;  %v18_v24 = vld [vmem:[%s507_s0 + $0x20] sm:$0xff]  ;;  %v27_v27 = vld [vmem:[%s507_s0 + $0x68] sm:$0xff] }
   0xa   :  { %259 = vmatprep.subr.mxu0 %v41_v4  ;;  %311 = vmatprep.subr.mxu1 %v41_v4  ;;  %v26_v25 = vld [vmem:[%s507_s0 + $0x60] sm:$0xff]  ;;  %v20_v28 = vld [vmem:[%s507_s0 + $0x30] sm:$0xff]  ;;  %v21_v30 = vld [vmem:[%s507_s0 + $0x38] sm:$0xff] }
   0xb   :  { %260 = vmatpush3.msra.mxu0 %v41_v4  ;;  %327 = vmatpush3.msra.mxu1 %v41_v4  ;;  %v28_v29 = vld [vmem:[%s507_s0 + $0x70] sm:$0xff]  ;;  %v29_v31 = vld [vmem:[%s507_s0 + $0x78] sm:$0xff]  ;;  %v218_v32 = vld [vmem:[%s508_s2] ss:$0 sm:$0xff] }
   0xc   :  { %261 = vmatprep.subr.mxu0 %v40_v5  ;;  %312 = vmatprep.subr.mxu1 %v40_v5 }
   0xd   :  { %262 = vmatpush3.msra.mxu0 %v40_v5  ;;  %328 = vmatpush3.msra.mxu1 %v40_v5 }
   0xe   :  { %263 = vmatprep.subr.mxu0 %v39_v6  ;;  %313 = vmatprep.subr.mxu1 %v39_v6 }
   0xf   :  { %264 = vmatpush3.msra.mxu0 %v39_v6  ;;  %329 = vmatpush3.msra.mxu1 %v39_v6 }
  0x10   :  { %265 = vmatprep.subr.mxu0 %v38_v7  ;;  %314 = vmatprep.subr.mxu1 %v38_v7 }
  0x11   :  { %266 = vmatpush3.msra.mxu0 %v38_v7  ;;  %330 = vmatpush3.msra.mxu1 %v38_v7 }
  0x12   :  { %267 = vmatprep.subr.mxu0 %v37_v8  ;;  %315 = vmatprep.subr.mxu1 %v37_v8 }
  0x13   :  { %268 = vmatpush3.msra.mxu0 %v37_v8  ;;  %331 = vmatpush3.msra.mxu1 %v37_v8 }
  0x14   :  { %269 = vmatprep.subr.mxu0 %v36_v9  ;;  %316 = vmatprep.subr.mxu1 %v36_v9 }
  0x15   :  { %270 = vmatpush3.msra.mxu0 %v36_v9  ;;  %332 = vmatpush3.msra.mxu1 %v36_v9 }
  0x16   :  { %271 = vmatprep.subr.mxu0 %v35_v10  ;;  %317 = vmatprep.subr.mxu1 %v35_v10 }
  0x17   :  { %272 = vmatpush3.msra.mxu0 %v35_v10  ;;  %333 = vmatpush3.msra.mxu1 %v35_v10 }
  0x18   :  { %273 = vmatprep.subr.mxu0 %v34_v11  ;;  %318 = vmatprep.subr.mxu1 %v34_v11 }
  0x19   :  { %274 = vmatpush3.msra.mxu0 %v34_v11  ;;  %334 = vmatpush3.msra.mxu1 %v34_v11 }
  0x1a   :  { %275 = vmatprep.subr.mxu0 %v33_v12  ;;  %319 = vmatprep.subr.mxu1 %v33_v12 }
  0x1b   :  { %276 = vmatpush3.msra.mxu0 %v33_v12  ;;  %335 = vmatpush3.msra.mxu1 %v33_v12 }
  0x1c   :  { %277 = vmatprep.subr.mxu0 %v32_v13  ;;  %320 = vmatprep.subr.mxu1 %v32_v13 }
  0x1d   :  { %278 = vmatpush3.msra.mxu0 %v32_v13  ;;  %336 = vmatpush3.msra.mxu1 %v32_v13 }
  0x1e   :  { %279 = vmatprep.subr.mxu0 %v31_v14  ;;  %321 = vmatprep.subr.mxu1 %v31_v14 }
  0x1f   :  { %280 = vmatpush3.msra.mxu0 %v31_v14  ;;  %337 = vmatpush3.msra.mxu1 %v31_v14 }
  0x20   :  { %281 = vmatprep.subr.mxu0 %v30_v15  ;;  %322 = vmatprep.subr.mxu1 %v30_v15 }
  0x21   :  { %282 = vmatpush3.msra.mxu0 %v30_v15  ;;  %338 = vmatpush3.msra.mxu1 %v30_v15 }
  0x22   :  { %283 = vmatprep.mubr.f32.mxu0 %v14_v16  ;;  %295 = vmatprep.mubr.f32.mxu1 %v22_v17 }
  0x23   :  { %284 = vmatmul.mubr.f32.vlgmr.msra.gmra.mxu0 %v15_v18  ;;  %296 = vmatmul.mubr.f32.vlgmr.msra.gmra.mxu1 %v23_v19 }
  0x24   :  { %286 = vmatprep.mubr.f32.mxu0 %v16_v20  ;;  %298 = vmatprep.mubr.f32.mxu1 %v24_v21 }
  0x27   :  { %287 = vmatmul.mubr.f32.gmra.mxu0 %v17_v22  ;;  %299 = vmatmul.mubr.f32.gmra.mxu1 %v25_v23 }
  0x28   :  { %289 = vmatprep.mubr.f32.mxu0 %v18_v24  ;;  %301 = vmatprep.mubr.f32.mxu1 %v26_v25 }
  0x2b   :  { %290 = vmatmul.mubr.f32.gmra.mxu0 %v19_v26  ;;  %302 = vmatmul.mubr.f32.gmra.mxu1 %v27_v27 }
  0x2c   :  { %292 = vmatprep.mubr.f32.mxu0 %v20_v28  ;;  %304 = vmatprep.mubr.f32.mxu1 %v28_v29 }
  0x2f   :  { %293 = vmatmul.mubr.f32.gmra.mxu0 %v21_v30  ;;  %305 = vmatmul.mubr.f32.gmra.mxu1 %v29_v31 }
  0xe3   :  { %v285_v33 = vpop.f32.mrf.mxu0  ;;  %v297_v34 = vpop.f32.mrf.mxu1 }
  0xe4   :  { %v125_v35 = vadd.f32 %v285_v33, %v218_v32  ;;  %v165_v36 = vadd.f32 %v297_v34, %v218_v32 }
  0xe5   :  { %v119_v37 = vpop.f32.mrf.mxu0  ;;  %v159_v38 = vpop.f32.mrf.mxu1 }
  0xe6   :  { %199 = vst [vmem:[%s509_s3 + $0x8] sm:$0xff] %v125_v35  ;;  %207 = vst [vmem:[%s509_s3 + $0x48] sm:$0xff] %v165_v36  ;;  %v120_v39 = vadd.f32 %v218_v32, %v119_v37  ;;  %v160_v40 = vadd.f32 %v218_v32, %v159_v38 }
  0xe7   :  { %v288_v41 = vpop.f32.mrf.mxu0  ;;  %v300_v42 = vpop.f32.mrf.mxu1 }
  0xe8   :  { %198 = vst [vmem:[%s509_s3] sm:$0xff] %v120_v39  ;;  %206 = vst [vmem:[%s509_s3 + $0x40] sm:$0xff] %v160_v40  ;;  %v135_v43 = vadd.f32 %v288_v41, %v218_v32  ;;  %v175_v44 = vadd.f32 %v300_v42, %v218_v32 }
  0xe9   :  { %v129_v45 = vpop.f32.mrf.mxu0  ;;  %v169_v46 = vpop.f32.mrf.mxu1 }
  0xea   :  { %201 = vst [vmem:[%s509_s3 + $0x18] sm:$0xff] %v135_v43  ;;  %209 = vst [vmem:[%s509_s3 + $0x58] sm:$0xff] %v175_v44  ;;  %v130_v47 = vadd.f32 %v218_v32, %v129_v45  ;;  %v170_v48 = vadd.f32 %v218_v32, %v169_v46 }
  0xeb   :  { %v291_v49 = vpop.f32.mrf.mxu0  ;;  %v303_v50 = vpop.f32.mrf.mxu1 }
  0xec   :  { %200 = vst [vmem:[%s509_s3 + $0x10] sm:$0xff] %v130_v47  ;;  %208 = vst [vmem:[%s509_s3 + $0x50] sm:$0xff] %v170_v48  ;;  %v145_v51 = vadd.f32 %v291_v49, %v218_v32  ;;  %v185_v52 = vadd.f32 %v303_v50, %v218_v32 }
  0xed   :  { %v139_v53 = vpop.f32.mrf.mxu0  ;;  %v179_v54 = vpop.f32.mrf.mxu1 }
  0xee   :  { %203 = vst [vmem:[%s509_s3 + $0x28] sm:$0xff] %v145_v51  ;;  %211 = vst [vmem:[%s509_s3 + $0x68] sm:$0xff] %v185_v52  ;;  %v140_v55 = vadd.f32 %v218_v32, %v139_v53  ;;  %v180_v56 = vadd.f32 %v218_v32, %v179_v54 }
  0xef   :  { %v294_v57 = vpop.f32.mrf.mxu0  ;;  %v306_v58 = vpop.f32.mrf.mxu1 }
  0xf0   :  { %202 = vst [vmem:[%s509_s3 + $0x20] sm:$0xff] %v140_v55  ;;  %210 = vst [vmem:[%s509_s3 + $0x60] sm:$0xff] %v180_v56  ;;  %v155_v59 = vadd.f32 %v294_v57, %v218_v32  ;;  %v195_v60 = vadd.f32 %v306_v58, %v218_v32 }
  0xf1   :  { %v149_v61 = vpop.f32.mrf.mxu0  ;;  %v189_v62 = vpop.f32.mrf.mxu1 }
  0xf2   :  { %205 = vst [vmem:[%s509_s3 + $0x38] sm:$0xff] %v155_v59  ;;  %213 = vst [vmem:[%s509_s3 + $0x78] sm:$0xff] %v195_v60  ;;  %v150_v63 = vadd.f32 %v218_v32, %v149_v61  ;;  %v190_v0 = vadd.f32 %v218_v32, %v189_v62 }
  0xf4   :  { %204 = vst [vmem:[%s509_s3 + $0x30] sm:$0xff] %v150_v63  ;;  %212 = vst [vmem:[%s509_s3 + $0x70] sm:$0xff] %v190_v0 }

</bundles_post_ra>
